<compile_context>
chip_gen: v6e
topology: v6e:2x2x1
jax: 0.10.0
libtpu: 0.0.40
codegen_flags: <defaults>
</compile_context>

<pallas_src>
import jax
import jax.numpy as jnp
from jax.experimental import pallas as pl
from jax.experimental.pallas import tpu as pltpu


def mar_kernel(xr_ref, m_ref, b_ref, out_ref):
    # xr_ref: (TBR, 128) VMEM tile (R batch rows packed per 128-lane row)
    # m_ref : (128, R)   VMEM-resident block-diagonal folded weight
    # b_ref : (1, 1)     SMEM scalar folded bias
    z = jnp.dot(xr_ref[...], m_ref[...], preferred_element_type=jnp.float32)
    z = z + b_ref[0, 0]
    out_ref[...] = jnp.maximum(z, 0.0).astype(out_ref.dtype)


def _pick_tile_rows(num_rows, block_batch, R):
    """Pick the xr-row tile size (TBR) and the scoped VMEM limit."""
    try:
        vmem_bytes = int(pltpu.get_tpu_info().vmem_capacity_bytes)
    except Exception:
        vmem_bytes = 64 * 1024 * 1024  # conservative fallback (v7x per-core VMEM)
    # Raise the scoped VMEM limit above the small defaults (16/32 MiB), but keep
    # comfortable headroom under the physical capacity (v7x: 48 of 64 MiB).
    vmem_limit = max(16 * 1024 * 1024, min((vmem_bytes * 3) // 4, 96 * 1024 * 1024))
    # Per xr-row pipelined-buffer cost:
    #   x  : 2 buffers * 128 lanes * 4 B   (dense)
    #   out: 2 buffers * 128 lanes * 4 B   ((TBR, R) tile is lane-padded to 128)
    bytes_per_row = 2048
    tbr_max = max(8, (vmem_limit // 2) // bytes_per_row)

    if block_batch is not None:
        tbr = max(1, block_batch // R)
    else:
        # >= 2 grid steps when possible so v7x can shard the parallel axis on 2 TCs.
        tbr = min(tbr_max, pl.cdiv(num_rows, 2))
    if tbr >= num_rows:
        tbr = num_rows                      # single full-extent block
    else:
        tbr = max(8, (tbr // 8) * 8)        # keep the sublane dim a multiple of 8
    return tbr, vmem_limit


def mar_forward(x, w1, b1, w2, b2, *, block_batch=None):
    """out = ReLU(linear_2(linear_1(x))); weights stored as (in, out)."""
    B, In = x.shape
    O = w2.shape[1]
    # TODO(synk): for output_size > 1 use a lane-dense (rows, O) output block and a
    # (1, O) VMEM bias row instead of the SMEM scalar + packed-row trick below.
    assert O == 1, "mar_forward kernel is specialised for output_size == 1"
    assert 128 % In == 0, "kernel packs 128 // input_size batch rows per lane row"
    R = 128 // In                                    # batch rows per 128-lane row

    # Exact affine fold (tiny; hoisted/fused by the jit wrapping this function).
    w_fold = jnp.dot(w1, w2).reshape(In)             # (In,)
    b_fold = (jnp.dot(b1, w2) + b2).reshape(1, 1)    # (1, 1) scalar
    # Block-diagonal expansion: M[c, g] = w_fold[c % In] * (c // In == g).
    eye = jnp.eye(R, dtype=w_fold.dtype)
    m = (eye[:, None, :] * w_fold[None, :, None]).reshape(R * In, R)   # (128, R)

    # Only pad when B is not a multiple of R (a full jnp.pad costs an extra HBM
    # pass over x, so the common aligned path does zero copies).
    pad_rows = (-B) % R
    xp = x if pad_rows == 0 else jnp.pad(x, ((0, pad_rows), (0, 0)))
    Bp = B + pad_rows
    num_rows = Bp // R
    xr = xp.reshape(num_rows, 128)                   # free bitcast (row-major)

    tbr, vmem_limit = _pick_tile_rows(num_rows, block_batch, R)
    grid = pl.cdiv(num_rows, tbr)                    # ragged last block is masked

    cost = pl.CostEstimate(
        flops=2 * num_rows * 128 * R,
        transcendentals=0,
        bytes_accessed=num_rows * 128 * 4 + num_rows * R * 4 + 128 * R * 4,
    )

    out_r = pl.pallas_call(
        mar_kernel,
        out_shape=jax.ShapeDtypeStruct((num_rows, R), x.dtype),
        grid_spec=pl.GridSpec(
            grid=(grid,),
            in_specs=[
                pl.BlockSpec((tbr, 128), lambda i: (i, 0)),          # xr: batch-tiled
                pl.BlockSpec((128, R), lambda i: (0, 0)),            # folded weight: resident
                pl.BlockSpec(memory_space=pltpu.MemorySpace.SMEM),   # folded bias scalar
            ],
            out_specs=pl.BlockSpec((tbr, R), lambda i: (i, 0)),
        ),
        compiler_params=pltpu.CompilerParams(
            dimension_semantics=("parallel",),       # batch axis -> both TCs on v7x
            vmem_limit_bytes=vmem_limit,
        ),
        cost_estimate=cost,
    )(xr, m, b_fold)

    out = out_r.reshape(Bp, 1)                       # free bitcast back to (Bp, 1)
    return out if pad_rows == 0 else out[:B]


if __name__ == "__main__":
    # mAR(input_size=16, hidden_size=32, output_size=1)
    input_size, hidden_size, output_size = 16, 32, 1
    batch = 200  # multiple of 8 (no pad/copy) but not of the batch tile -> ragged grid

    key = jax.random.PRNGKey(0)
    kx, k1, kb1, k2, kb2 = jax.random.split(key, 5)

    x = jax.random.normal(kx, (batch, input_size), dtype=jnp.float32)

    # Deterministic synthetic parameters (PyTorch nn.Linear shapes, stored transposed).
    w1 = jax.random.normal(k1, (input_size, hidden_size), dtype=jnp.float32) * 0.1
    b1 = jax.random.normal(kb1, (1, hidden_size), dtype=jnp.float32) * 0.1
    w2 = jax.random.normal(k2, (hidden_size, output_size), dtype=jnp.float32) * 0.1
    b2 = jax.random.normal(kb2, (1, output_size), dtype=jnp.float32) * 0.1

    # jit the whole forward so the tiny weight fold fuses with the kernel launch.
    fwd = jax.jit(mar_forward, static_argnames=("block_batch",))
    # block_batch=64 -> 4 pipelined grid steps with a ragged last block on this tiny test.
    out = fwd(x, w1, b1, w2, b2, block_batch=64)
    jax.block_until_ready(out)

    # Pure-JAX reference of the original (unfolded) two-layer module.
    ref = jnp.maximum((x @ w1 + b1) @ w2 + b2, 0.0)
    assert out.shape == (batch, output_size)
    assert jnp.allclose(out, ref, atol=1e-5, rtol=1e-5)

    print("KERNEL_OK")
</pallas_src>

<mosaic_0001>
module attributes {stable_mosaic.version = 11 : i64} {
  func.func @mar_kernel(%arg0: i32, %arg1: memref<8x128xf32, #tpu.memory_space<vmem>>, %arg2: memref<128x8xf32, #tpu.memory_space<vmem>>, %arg3: memref<1x1xf32, #tpu.memory_space<smem>>, %arg4: memref<8x8xf32, #tpu.memory_space<vmem>>) attributes {dimension_semantics = [#tpu.dimension_semantics<parallel>], iteration_bounds = array<i64: 4>, scalar_prefetch = 0 : i64, scratch_operands = 0 : i64, tpu.core_type = #tpu.core_type<tc>, window_params = [{transform_indices = @transform_0, window_bounds = array<i64: 8, 128>}, {pipeline_mode = #tpu.pipeline_mode<synchronous>, transform_indices = @transform_1, window_bounds = array<i64: 128, 8>}, {transform_indices = @transform_2, window_bounds = array<i64: 1, 1>}, {transform_indices = @transform_3, window_bounds = array<i64: 8, 8>}]} {
    %c0 = arith.constant 0 : index
    %c0_0 = arith.constant 0 : index
    %0 = vector.load %arg1[%c0, %c0_0] : memref<8x128xf32, #tpu.memory_space<vmem>>, vector<8x128xf32>
    %c0_1 = arith.constant 0 : index
    %c0_2 = arith.constant 0 : index
    %1 = vector.load %arg2[%c0_1, %c0_2] : memref<128x8xf32, #tpu.memory_space<vmem>>, vector<128x8xf32>
    %cst = arith.constant dense<0.000000e+00> : vector<8x8xf32>
    %2 = tpu.matmul %0, %1, %cst {dimension_numbers = #tpu.dot_dimension_numbers<[1], [0], [0], [1], [0, 0, 1, 1], [], []>} : vector<8x128xf32>, vector<128x8xf32>, vector<8x8xf32> -> vector<8x8xf32>
    %c0_3 = arith.constant 0 : index
    %c0_4 = arith.constant 0 : index
    %3 = memref.load %arg3[%c0_3, %c0_4] : memref<1x1xf32, #tpu.memory_space<smem>>
    %4 = vector.broadcast %3 : f32 to vector<8x8xf32>
    %5 = arith.addf %2, %4 : vector<8x8xf32>
    %cst_5 = arith.constant 0.000000e+00 : f32
    %6 = vector.broadcast %cst_5 : f32 to vector<8x8xf32>
    %7 = arith.maximumf %5, %6 : vector<8x8xf32>
    %c0_6 = arith.constant 0 : index
    %c0_7 = arith.constant 0 : index
    %8 = vector.load %arg4[%c0_6, %c0_7] : memref<8x8xf32, #tpu.memory_space<vmem>>, vector<8x8xf32>
    tpu.vector_store %arg4[%c0_6, %c0_7], %7 {strides = array<i32>} : memref<8x8xf32, #tpu.memory_space<vmem>>, vector<8x8xf32>,
    return
  }
  func.func @transform_0(%arg0: i32) -> (i32, i32) {
    %c0_i32 = arith.constant 0 : i32
    %c0_i32_0 = arith.constant 0 : i32
    return %arg0, %c0_i32 : i32, i32
  }
  func.func @transform_1(%arg0: i32) -> (i32, i32) {
    %c0_i32 = arith.constant 0 : i32
    %c0_i32_0 = arith.constant 0 : i32
    %c0_i32_1 = arith.constant 0 : i32
    return %c0_i32, %c0_i32_0 : i32, i32
  }
  func.func @transform_2(%arg0: i32) -> (i32, i32) {
    %c0_i32 = arith.constant 0 : i32
    %c0_i32_0 = arith.constant 0 : i32
    %c0_i32_1 = arith.constant 0 : i32
    return %c0_i32, %c0_i32_0 : i32, i32
  }
  func.func @transform_3(%arg0: i32) -> (i32, i32) {
    %c0_i32 = arith.constant 0 : i32
    %c0_i32_0 = arith.constant 0 : i32
    return %arg0, %c0_i32 : i32, i32
  }
}

</mosaic_0001>

<bundles_post_ra>
// kernel: mar_forward.1
= control target key start
LH: loop header
LB: loop body
LE: loop exit
PB: predicated region body
PF: predicated region fallthrough
CT: control target
= control target key end

     0   :  { %s416_s14 = smov 0   ;;  %s485_s0 = inlined_call_operand.vmem [shape: f32[25,128], index: 0, kind: input, shape index: {}]   ;;  %s486_s1 = inlined_call_operand.vmem [shape: f32[128,8], index: 1, kind: input, shape index: {}]   ;;  %s487_s2 = inlined_call_operand.<no memory space> [shape: f32[1,1], index: 2, kind: input, shape index: {}]   ;;  %s488_s3 = inlined_call_operand.vmem [shape: f32[25,8], index: 3, kind: output, shape index: {}]  }
   0x1   :  { %8 = sst [smem:[#allocation2]] %s487_s2 }
   0x2 LB: > { %s312_s15 = sadd.s32 4294967295, %s389_s14   ;;  %p316_p0 = scmp.ge.s32.totalorder %s389_s14, 1  ;;  %s389_s14 = sphi %s416_s14, %s14_s14  }
   0x3   : > { %p137_p1 = scmp.lt.s32.totalorder %s389_s14, 5 }
   0x5   : > { %p138_p2 = pnand %p316_p0, %p137_p1 }
   0x6   : > { %p159_p3 = scmp.lt.s32.totalorder (!%p138_p2), %s312_s15, 3 }
   0x7   : > { %141 = sbr.rel (%p138_p2) target bundleno = 243 (0xf3), region = 32 }
   0xc   : > { %v183_v0 = vld [vmem:[%s486_s1 + $0x78] sm:$0xff]  ;;  %v391_v1 = vmov 0.0   ;;  %v182_v2 = vld [vmem:[%s486_s1 + $0x70] sm:$0xff]  ;;  %vm392_vm0 = vmmov 0   ;;  %v181_v3 = vld [vmem:[%s486_s1 + $0x68] sm:$0xff]  ;;  %s490_s15 = smov (!%p159_p3, %s312_s15), 3 }
   0xd   : > { %338 = vmatprep.subr.mxu0 %v391_v1  ;;  %370 = vmatprep.mubr.msk.f32.mxu0 %vm392_vm0, %v391_v1  ;;  %v180_v4 = vld [vmem:[%s486_s1 + $0x60] sm:$0xff]  ;;  %v179_v5 = vld [vmem:[%s486_s1 + $0x58] sm:$0xff]  ;;  %v178_v6 = vld [vmem:[%s486_s1 + $0x50] sm:$0xff]  ;;  %s317_s16 = sshll.u32 %s490_s15, 3  ;;  %s184_s15 = sld [smem:[#allocation2]]  ;;  %vm257_vm1 = vcmask 64512  }
   0xe   : > { %339 = vmatpush3.msra.mxu0 %v183_v0  ;;  %v177_v7 = vld [vmem:[%s486_s1 + $0x48] sm:$0xff]  ;;  %v176_v8 = vld [vmem:[%s486_s1 + $0x40] sm:$0xff]  ;;  %v175_v9 = vld [vmem:[%s486_s1 + $0x38] sm:$0xff]  ;;  %s162_s22 = scalar_lea.vmem %s485_s0, %s317_s16  ;;  %s166_s27 = scalar_lea.vmem %s488_s3, %s317_s16 }
   0xf   : > { %340 = vmatprep.subr.mxu0 %v391_v1  ;;  %v174_v10 = vld [vmem:[%s486_s1 + $0x30] sm:$0xff]  ;;  %v173_v11 = vld [vmem:[%s486_s1 + $0x28] sm:$0xff]  ;;  %v172_v12 = vld [vmem:[%s486_s1 + $0x20] sm:$0xff] }
  0x10   : > { %341 = vmatpush3.msra.mxu0 %v182_v2  ;;  %v171_v13 = vld [vmem:[%s486_s1 + $0x18] sm:$0xff]  ;;  %v170_v14 = vld [vmem:[%s486_s1 + $0x10] sm:$0xff]  ;;  %v169_v15 = vld [vmem:[%s486_s1 + $0x8] sm:$0xff] }
  0x11   : > { %342 = vmatprep.subr.mxu0 %v391_v1  ;;  %v168_v16 = vld [vmem:[%s486_s1] sm:$0xff] }
  0x12   : > { %343 = vmatpush3.msra.mxu0 %v181_v3  ;;  %v167_v17 = vld [vmem:[%s162_s22] sm:$0xff] }
  0x13   : > { %344 = vmatprep.subr.mxu0 %v391_v1  ;;  %v185_v18 = vstv %s184_s15 }
  0x14   : > { %345 = vmatpush3.msra.mxu0 %v180_v4 }
  0x15   : > { %346 = vmatprep.subr.mxu0 %v391_v1 }
  0x16   : > { %347 = vmatpush3.msra.mxu0 %v179_v5 }
  0x17   : > { %348 = vmatprep.subr.mxu0 %v391_v1 }
  0x18   : > { %349 = vmatpush3.msra.mxu0 %v178_v6 }
  0x19   : > { %350 = vmatprep.subr.mxu0 %v391_v1 }
  0x1a   : > { %351 = vmatpush3.msra.mxu0 %v177_v7 }
  0x1b   : > { %352 = vmatprep.subr.mxu0 %v391_v1 }
  0x1c   : > { %353 = vmatpush3.msra.mxu0 %v176_v8 }
  0x1d   : > { %354 = vmatprep.subr.mxu0 %v391_v1 }
  0x1e   : > { %355 = vmatpush3.msra.mxu0 %v175_v9 }
  0x1f   : > { %356 = vmatprep.subr.mxu0 %v391_v1 }
  0x20   : > { %357 = vmatpush3.msra.mxu0 %v174_v10 }
  0x21   : > { %358 = vmatprep.subr.mxu0 %v391_v1 }
  0x22   : > { %359 = vmatpush3.msra.mxu0 %v173_v11 }
  0x23   : > { %360 = vmatprep.subr.mxu0 %v391_v1 }
  0x24   : > { %361 = vmatpush3.msra.mxu0 %v172_v12 }
  0x25   : > { %362 = vmatprep.subr.mxu0 %v391_v1 }
  0x26   : > { %363 = vmatpush3.msra.mxu0 %v171_v13 }
  0x27   : > { %364 = vmatprep.subr.mxu0 %v391_v1 }
  0x28   : > { %365 = vmatpush3.msra.mxu0 %v170_v14 }
  0x29   : > { %366 = vmatprep.subr.mxu0 %v391_v1 }
  0x2a   : > { %367 = vmatpush3.msra.mxu0 %v169_v15 }
  0x2b   : > { %368 = vmatprep.subr.mxu0 %v391_v1 }
  0x2c   : > { %369 = vmatpush3.msra.mxu0 %v168_v16 }
  0x2d   : > { %371 = vmatmul.mubr.f32.vlgmr.msra.gmra.mxu0 %v167_v17 }
  0xed   : > { %v252_v19 = vpop.f32.mrf.mxu0 }
  0xee   : > { %v253_v20 = vadd.f32 %v252_v19, %v185_v18 }
  0xef   : > { %v372_v21 = vpop.f32.mrf.mxu0 }
  0xf0   : > { %v256_v22 = vmax.f32 %v253_v20, 0.0 }
  0xf2   : > { %258 = vst.msk [vmem:[%s166_s27] sm:$0xff] %vm257_vm1, %v256_v22 }
  0xf3 PF: > { %s14_s14 = sadd.s32 1, %s389_s14  }
  0xf4   : > { %p11_p4 = scmp.ge.s32.totalorder %s14_s14, 6  }
  0xf6   :  { %13 = sbr.rel (!%p11_p4) target bundleno = 2 (0x2), region = 62 }

</bundles_post_ra>
